<compile_context>
chip_gen: v7x
topology: tpu7x:2x2x1
jax: 0.10.0
libtpu: 0.0.40
codegen_flags: <defaults>
</compile_context>

<pallas_src>
import math
import functools

import jax
import jax.numpy as jnp
from jax.experimental import pallas as pl
from jax.experimental.pallas import tpu as pltpu

# ----------------------------- configuration -------------------------------
D_MODEL = 32
NHEAD = 4
HEAD_DIM = D_MODEL // NHEAD
L_TGT = 8
L_MEM = 16
BATCH = 2
LN_EPS = 1e-5

# ---- packed param slab layout: (40, 192), one DMA ---------------------------
#   rows 0:32 , cols   0:128 -> Wvo   (head h block at cols h*32:(h+1)*32)
#   rows 0:32 , cols 128:160 -> Wq * (1/sqrt(head_dim))
#   rows 0:32 , cols 160:192 -> Wk
#   row 32, cols 0:32 -> bq * scale     row 33 -> bk     row 34 -> bv@Wo + bo
#   row 35, cols 0:32 -> LN gamma       row 36 -> LN beta
#   rows 37:40 / remaining cols -> zero padding (sublane multiple of 8)
_W_ROWS = 40
_W_COLS = 6 * D_MODEL                 # 192
_COL_WVO = 0
_COL_WQ = NHEAD * D_MODEL             # 128
_COL_WK = _COL_WQ + D_MODEL           # 160
_ROW_BQ = D_MODEL                     # 32
_ROW_BK = _ROW_BQ + 1
_ROW_BO = _ROW_BQ + 2
_ROW_GAMMA = _ROW_BQ + 3
_ROW_BETA = _ROW_BQ + 4


# ------------------------------- kernel ------------------------------------
def _cross_attn_kernel(tgt_ref, mem_ref, qpos_ref, mpos_ref, w_ref, out_ref, *,
                       nhead, head_dim, n_q, n_kv, batch):
    d = nhead * head_dim

    tgt = tgt_ref[...]                      # (n_q,  d)  rows = (l, b) interleaved
    mem = mem_ref[...]                      # (n_kv, d)
    q_in = tgt + qpos_ref[...]              # with_pos_embed(tgt, query_pos)
    k_in = mem + mpos_ref[...]              # with_pos_embed(memory, pos)

    # ---- unpack the single param slab ---------------------------------------
    w = w_ref[...]                                            # (40, 192)
    wvo = w[0:d, _COL_WVO:_COL_WVO + nhead * d]               # (32, 128)
    wqk = w[0:d, _COL_WQ:_COL_WK + d]                         # (32, 64) [Wq_s|Wk]
    bq = w[_ROW_BQ:_ROW_BQ + 1, 0:d]                          # already * scale
    bk = w[_ROW_BK:_ROW_BK + 1, 0:d]
    bo = w[_ROW_BO:_ROW_BO + 1, 0:d]                          # = bv@Wo + bo
    gamma = w[_ROW_GAMMA:_ROW_GAMMA + 1, 0:d]
    beta = w[_ROW_BETA:_ROW_BETA + 1, 0:d]

    # ---- fused Q/K projection: one 64-lane MXU launch ------------------------
    qk_lhs = jnp.concatenate([q_in, k_in], axis=0)            # (n_q+n_kv, 32)
    qk = jnp.dot(qk_lhs, wqk, preferred_element_type=jnp.float32)
    q = qk[0:n_q, 0:d] + bq                                   # scale folded in
    k = qk[n_q:n_q + n_kv, d:2 * d] + bk

    # ---- Wv·Wo fold: v' = mem @ Wvo, one 128-lane MXU launch ------------------
    # Head h's effective value-output block lives in cols h*d:(h+1)*d.
    vprime = jnp.dot(mem, wvo, preferred_element_type=jnp.float32)  # (n_kv, 128)

    # ---- block-diagonal (same-batch) mask ------------------------------------
    # Row/col index r maps to batch r % B (seq-first contiguous flat order).
    row_b = jax.lax.broadcasted_iota(jnp.int32, (n_q, n_kv), 0) % batch
    col_b = jax.lax.broadcasted_iota(jnp.int32, (n_q, n_kv), 1) % batch
    same_batch = row_b == col_b
    neg_big = jnp.float32(-1e30)            # safe in f32 (activations are f32)

    # ---- per-head attention, accumulated straight into the output ------------
    attn = jnp.zeros((n_q, d), jnp.float32)
    for h in range(nhead):
        sl_h = slice(h * head_dim, (h + 1) * head_dim)
        s = jax.lax.dot_general(q[:, sl_h], k[:, sl_h], (((1,), (1,)), ((), ())),
                                preferred_element_type=jnp.float32)  # (n_q,n_kv)
        s = jnp.where(same_batch, s, neg_big)
        s = s - jnp.max(s, axis=-1, keepdims=True)
        p = jnp.exp(s)
        denom = jnp.sum(p, axis=-1, keepdims=True)
        r = pl.reciprocal(denom, approx=True)       # EUP slot
        r = r * (2.0 - denom * r)                   # one Newton step -> f32 acc.
        p = p * r
        attn = attn + jnp.dot(p, vprime[:, h * d:(h + 1) * d],
                              preferred_element_type=jnp.float32)
    attn = attn + bo                                # fused bv@Wo + bo

    # ---- residual + LayerNorm (post-norm; dropout p=0 is identity) -----------
    x = tgt + attn
    mu = jnp.mean(x, axis=-1, keepdims=True)
    xc = x - mu
    var = jnp.mean(xc * xc, axis=-1, keepdims=True)
    y = xc * jax.lax.rsqrt(var + LN_EPS)
    out_ref[...] = (y * gamma + beta).astype(out_ref.dtype)


# ------------------------------- wrapper ------------------------------------
def cross_attention_layer(tgt, memory, w_slab, pos=None, query_pos=None,
                          memory_mask=None, memory_key_padding_mask=None):
    """tgt: (L_tgt, B, D), memory: (L_mem, B, D). Returns (L_tgt, B, D)."""
    if memory_mask is not None or memory_key_padding_mask is not None:
        # TODO(synk): attention masks not implemented (None in this config).
        raise NotImplementedError("memory_mask / memory_key_padding_mask")

    Lq, B, D = tgt.shape
    Lk = memory.shape[0]

    if query_pos is None:
        query_pos = jnp.zeros_like(tgt)
    if pos is None:
        pos = jnp.zeros_like(memory)

    # (L, B, D) -> (L*B, D) is a contiguous (free) reshape, NOT a transpose.
    # Row r <-> (l = r // B, b = r % B); the kernel keeps this order end-to-end.
    tgt2 = tgt.reshape(Lq * B, D)
    qpos2 = query_pos.reshape(Lq * B, D)
    mem2 = memory.reshape(Lk * B, D)
    mpos2 = pos.reshape(Lk * B, D)

    kernel = functools.partial(
        _cross_attn_kernel, nhead=NHEAD, head_dim=HEAD_DIM,
        n_q=Lq * B, n_kv=Lk * B, batch=B)

    vmem = pl.BlockSpec(memory_space=pltpu.MemorySpace.VMEM)
    out2 = pl.pallas_call(
        kernel,
        out_shape=jax.ShapeDtypeStruct((Lq * B, D), tgt.dtype),
        in_specs=[vmem] * 5,
        out_specs=vmem,
    )(tgt2, mem2, qpos2, mpos2, w_slab)

    return out2.reshape(Lq, B, D)      # free reshape back to (L_tgt, B, D)


# --------------------------- param init & packing ----------------------------
def xavier_uniform(key, shape):
    fan_in, fan_out = shape[0], shape[1]
    a = math.sqrt(6.0 / (fan_in + fan_out))
    return jax.random.uniform(key, shape, jnp.float32, -a, a)


def init_raw_params(key):
    """PyTorch-equivalent parameterization (weights applied as x @ W)."""
    ks = jax.random.split(key, 4)
    z = jnp.zeros((D_MODEL,), jnp.float32)
    return {
        "wq": xavier_uniform(ks[0], (D_MODEL, D_MODEL)),
        "wk": xavier_uniform(ks[1], (D_MODEL, D_MODEL)),
        "wv": xavier_uniform(ks[2], (D_MODEL, D_MODEL)),
        "wo": xavier_uniform(ks[3], (D_MODEL, D_MODEL)),
        "bq": z, "bk": z, "bv": z, "bo": z,       # PyTorch MHA inits biases to 0
        "gamma": jnp.ones((D_MODEL,), jnp.float32),
        "beta": z,
    }


def pack_params(raw):
    """One-time folds: scale into Wq/bq, per-head Wv@Wo, bv@Wo+bo, single slab."""
    D, H, dh = D_MODEL, NHEAD, HEAD_DIM
    scale = 1.0 / math.sqrt(dh)
    wq_s = raw["wq"] * scale
    bq_s = raw["bq"] * scale
    wvo = jnp.concatenate(
        [raw["wv"][:, h * dh:(h + 1) * dh] @ raw["wo"][h * dh:(h + 1) * dh, :]
         for h in range(H)], axis=1)                                   # (D, H*D)
    bo_f = raw["bv"] @ raw["wo"] + raw["bo"]

    slab = jnp.zeros((_W_ROWS, _W_COLS), jnp.float32)
    slab = slab.at[0:D, _COL_WVO:_COL_WVO + H * D].set(wvo)
    slab = slab.at[0:D, _COL_WQ:_COL_WQ + D].set(wq_s)
    slab = slab.at[0:D, _COL_WK:_COL_WK + D].set(raw["wk"])
    slab = slab.at[_ROW_BQ, 0:D].set(bq_s)
    slab = slab.at[_ROW_BK, 0:D].set(raw["bk"])
    slab = slab.at[_ROW_BO, 0:D].set(bo_f)
    slab = slab.at[_ROW_GAMMA, 0:D].set(raw["gamma"])
    slab = slab.at[_ROW_BETA, 0:D].set(raw["beta"])
    return slab


# --------------------------- plain-JAX reference ----------------------------
def reference(tgt, memory, raw, pos=None, query_pos=None):
    wq, wk, wv, wo = raw["wq"], raw["wk"], raw["wv"], raw["wo"]
    bq, bk, bv, bo = raw["bq"], raw["bk"], raw["bv"], raw["bo"]
    gamma, beta = raw["gamma"], raw["beta"]

    if query_pos is None:
        query_pos = jnp.zeros_like(tgt)
    if pos is None:
        pos = jnp.zeros_like(memory)

    tgt_b = jnp.transpose(tgt, (1, 0, 2))        # (B, Lq, D)
    mem_b = jnp.transpose(memory, (1, 0, 2))     # (B, Lk, D)
    q_in = tgt_b + jnp.transpose(query_pos, (1, 0, 2))
    k_in = mem_b + jnp.transpose(pos, (1, 0, 2))

    q = q_in @ wq + bq
    k = k_in @ wk + bk
    v = mem_b @ wv + bv

    B, Lq, _ = q.shape
    Lk = k.shape[1]
    qh = q.reshape(B, Lq, NHEAD, HEAD_DIM).transpose(0, 2, 1, 3)
    kh = k.reshape(B, Lk, NHEAD, HEAD_DIM).transpose(0, 2, 1, 3)
    vh = v.reshape(B, Lk, NHEAD, HEAD_DIM).transpose(0, 2, 1, 3)

    s = jnp.einsum("bhqd,bhkd->bhqk", qh, kh) / math.sqrt(HEAD_DIM)
    p = jax.nn.softmax(s, axis=-1)
    o = jnp.einsum("bhqk,bhkd->bhqd", p, vh)
    o = o.transpose(0, 2, 1, 3).reshape(B, Lq, D_MODEL)
    attn = o @ wo + bo

    x = tgt_b + attn
    mu = jnp.mean(x, axis=-1, keepdims=True)
    var = jnp.mean((x - mu) ** 2, axis=-1, keepdims=True)
    y = (x - mu) / jnp.sqrt(var + LN_EPS)
    y = y * gamma + beta
    return jnp.transpose(y, (1, 0, 2))


# --------------------------------- main --------------------------------------
if __name__ == "__main__":
    key = jax.random.PRNGKey(0)
    k_p, k_tgt, k_mem, k_qpos, k_pos = jax.random.split(key, 5)

    raw = init_raw_params(k_p)
    w_slab = pack_params(raw)

    tgt = jax.random.normal(k_tgt, (L_TGT, BATCH, D_MODEL), jnp.float32)
    memory = jax.random.normal(k_mem, (L_MEM, BATCH, D_MODEL), jnp.float32)
    query_pos = jax.random.normal(k_qpos, (L_TGT, BATCH, D_MODEL), jnp.float32)
    pos = jax.random.normal(k_pos, (L_MEM, BATCH, D_MODEL), jnp.float32)

    fwd = jax.jit(cross_attention_layer)
    out = jax.block_until_ready(
        fwd(tgt, memory, w_slab, pos=pos, query_pos=query_pos))
    ref = jax.block_until_ready(
        reference(tgt, memory, raw, pos=pos, query_pos=query_pos))

    assert out.shape == (L_TGT, BATCH, D_MODEL)
    max_err = float(jnp.max(jnp.abs(out - ref)))
    assert jnp.allclose(out, ref, atol=5e-4, rtol=5e-4), max_err
    print("KERNEL_OK")
</pallas_src>

<mosaic_0001>
module attributes {stable_mosaic.version = 11 : i64} {
  func.func @_cross_attn_kernel(%arg0: memref<16x32xf32, #tpu.memory_space<vmem>>, %arg1: memref<32x32xf32, #tpu.memory_space<vmem>>, %arg2: memref<16x32xf32, #tpu.memory_space<vmem>>, %arg3: memref<32x32xf32, #tpu.memory_space<vmem>>, %arg4: memref<40x192xf32, #tpu.memory_space<vmem>>, %arg5: memref<16x32xf32, #tpu.memory_space<vmem>>) attributes {dimension_semantics = [], scalar_prefetch = 0 : i64, scratch_operands = 0 : i64, tpu.core_type = #tpu.core_type<tc>} {
    %c0 = arith.constant 0 : index
    %c0_0 = arith.constant 0 : index
    %0 = vector.load %arg0[%c0, %c0_0] : memref<16x32xf32, #tpu.memory_space<vmem>>, vector<16x32xf32>
    %c0_1 = arith.constant 0 : index
    %c0_2 = arith.constant 0 : index
    %1 = vector.load %arg1[%c0_1, %c0_2] : memref<32x32xf32, #tpu.memory_space<vmem>>, vector<32x32xf32>
    %c0_3 = arith.constant 0 : index
    %c0_4 = arith.constant 0 : index
    %2 = vector.load %arg2[%c0_3, %c0_4] : memref<16x32xf32, #tpu.memory_space<vmem>>, vector<16x32xf32>
    %3 = arith.addf %0, %2 : vector<16x32xf32>
    %c0_5 = arith.constant 0 : index
    %c0_6 = arith.constant 0 : index
    %4 = vector.load %arg3[%c0_5, %c0_6] : memref<32x32xf32, #tpu.memory_space<vmem>>, vector<32x32xf32>
    %5 = arith.addf %1, %4 : vector<32x32xf32>
    %c0_7 = arith.constant 0 : index
    %c0_8 = arith.constant 0 : index
    %6 = vector.load %arg4[%c0_7, %c0_8] : memref<40x192xf32, #tpu.memory_space<vmem>>, vector<40x192xf32>
    %7 = vector.extract_strided_slice %6 {offsets = [0, 0], sizes = [32, 128], strides = [1, 1]} : vector<40x192xf32> to vector<32x128xf32>
    %8 = vector.extract_strided_slice %6 {offsets = [0, 128], sizes = [32, 64], strides = [1, 1]} : vector<40x192xf32> to vector<32x64xf32>
    %9 = vector.extract_strided_slice %6 {offsets = [32, 0], sizes = [1, 32], strides = [1, 1]} : vector<40x192xf32> to vector<1x32xf32>
    %10 = vector.extract_strided_slice %6 {offsets = [33, 0], sizes = [1, 32], strides = [1, 1]} : vector<40x192xf32> to vector<1x32xf32>
    %11 = vector.extract_strided_slice %6 {offsets = [34, 0], sizes = [1, 32], strides = [1, 1]} : vector<40x192xf32> to vector<1x32xf32>
    %12 = vector.extract_strided_slice %6 {offsets = [35, 0], sizes = [1, 32], strides = [1, 1]} : vector<40x192xf32> to vector<1x32xf32>
    %13 = vector.extract_strided_slice %6 {offsets = [36, 0], sizes = [1, 32], strides = [1, 1]} : vector<40x192xf32> to vector<1x32xf32>
    %14 = tpu.concatenate %3, %5 in 0 : vector<16x32xf32>, vector<32x32xf32> -> vector<48x32xf32>
    %cst = arith.constant dense<0.000000e+00> : vector<48x64xf32>
    %15 = tpu.matmul %14, %8, %cst {dimension_numbers = #tpu.dot_dimension_numbers<[1], [0], [0], [1], [0, 0, 1, 1], [], []>} : vector<48x32xf32>, vector<32x64xf32>, vector<48x64xf32> -> vector<48x64xf32>
    %16 = vector.extract_strided_slice %15 {offsets = [0, 0], sizes = [16, 32], strides = [1, 1]} : vector<48x64xf32> to vector<16x32xf32>
    %17 = vector.broadcast %9 : vector<1x32xf32> to vector<16x32xf32>
    %18 = arith.addf %16, %17 : vector<16x32xf32>
    %19 = vector.extract_strided_slice %15 {offsets = [16, 32], sizes = [32, 32], strides = [1, 1]} : vector<48x64xf32> to vector<32x32xf32>
    %20 = vector.broadcast %10 : vector<1x32xf32> to vector<32x32xf32>
    %21 = arith.addf %19, %20 : vector<32x32xf32>
    %cst_9 = arith.constant dense<0.000000e+00> : vector<32x128xf32>
    %22 = tpu.matmul %1, %7, %cst_9 {dimension_numbers = #tpu.dot_dimension_numbers<[1], [0], [0], [1], [0, 0, 1, 1], [], []>} : vector<32x32xf32>, vector<32x128xf32>, vector<32x128xf32> -> vector<32x128xf32>
    %23 = tpu.iota {dimensions = array<i32: 0>} : vector<16x32xi32>
    %c2_i32 = arith.constant 2 : i32
    %c0_i32 = arith.constant 0 : i32
    %24 = arith.cmpi eq, %c2_i32, %c0_i32 : i32
    %c1_i32 = arith.constant 1 : i32
    %25 = arith.select %24, %c1_i32, %c2_i32 : i32
    %26 = vector.broadcast %25 : i32 to vector<16x32xi32>
    %27 = arith.remsi %23, %26 : vector<16x32xi32>
    %c0_i32_10 = arith.constant 0 : i32
    %28 = vector.broadcast %c0_i32_10 : i32 to vector<16x32xi32>
    %29 = arith.cmpi ne, %27, %28 : vector<16x32xi32>
    %c0_i32_11 = arith.constant 0 : i32
    %30 = vector.broadcast %c0_i32_11 : i32 to vector<16x32xi32>
    %31 = arith.cmpi slt, %27, %30 : vector<16x32xi32>
    %c0_i32_12 = arith.constant 0 : i32
    %32 = arith.cmpi slt, %25, %c0_i32_12 : i32
    %33 = vector.broadcast %32 : i1 to vector<16x32xi1>
    %34 = vector.broadcast %33 : vector<16x32xi1> to vector<16x32xi1>
    %35 = arith.xori %31, %34 : vector<16x32xi1>
    %36 = arith.andi %35, %29 : vector<16x32xi1>
    %37 = vector.broadcast %25 : i32 to vector<16x32xi32>
    %38 = arith.addi %27, %37 : vector<16x32xi32>
    %39 = arith.select %36, %38, %27 : vector<16x32xi1>, vector<16x32xi32>
    %40 = tpu.iota {dimensions = array<i32: 1>} : vector<16x32xi32>
    %c2_i32_13 = arith.constant 2 : i32
    %c0_i32_14 = arith.constant 0 : i32
    %41 = arith.cmpi eq, %c2_i32_13, %c0_i32_14 : i32
    %c1_i32_15 = arith.constant 1 : i32
    %42 = arith.select %41, %c1_i32_15, %c2_i32_13 : i32
    %43 = vector.broadcast %42 : i32 to vector<16x32xi32>
    %44 = arith.remsi %40, %43 : vector<16x32xi32>
    %c0_i32_16 = arith.constant 0 : i32
    %45 = vector.broadcast %c0_i32_16 : i32 to vector<16x32xi32>
    %46 = arith.cmpi ne, %44, %45 : vector<16x32xi32>
    %c0_i32_17 = arith.constant 0 : i32
    %47 = vector.broadcast %c0_i32_17 : i32 to vector<16x32xi32>
    %48 = arith.cmpi slt, %44, %47 : vector<16x32xi32>
    %c0_i32_18 = arith.constant 0 : i32
    %49 = arith.cmpi slt, %42, %c0_i32_18 : i32
    %50 = vector.broadcast %49 : i1 to vector<16x32xi1>
    %51 = vector.broadcast %50 : vector<16x32xi1> to vector<16x32xi1>
    %52 = arith.xori %48, %51 : vector<16x32xi1>
    %53 = arith.andi %52, %46 : vector<16x32xi1>
    %54 = vector.broadcast %42 : i32 to vector<16x32xi32>
    %55 = arith.addi %44, %54 : vector<16x32xi32>
    %56 = arith.select %53, %55, %44 : vector<16x32xi1>, vector<16x32xi32>
    %57 = arith.cmpi eq, %39, %56 : vector<16x32xi32>
    %cst_19 = arith.constant 0.000000e+00 : f32
    %58 = vector.broadcast %cst_19 : f32 to vector<16x32xf32>
    %59 = vector.extract_strided_slice %18 {offsets = [0, 0], sizes = [16, 8], strides = [1, 1]} : vector<16x32xf32> to vector<16x8xf32>
    %60 = vector.extract_strided_slice %21 {offsets = [0, 0], sizes = [32, 8], strides = [1, 1]} : vector<32x32xf32> to vector<32x8xf32>
    %cst_20 = arith.constant dense<0.000000e+00> : vector<16x32xf32>
    %61 = tpu.matmul %59, %60, %cst_20 {dimension_numbers = #tpu.dot_dimension_numbers<[1], [1], [0], [0], [0, 0, 1, 0], [], []>} : vector<16x8xf32>, vector<32x8xf32>, vector<16x32xf32> -> vector<16x32xf32>
    %cst_21 = arith.constant -1.000000e+30 : f32
    %62 = vector.broadcast %cst_21 : f32 to vector<16x32xf32>
    %63 = arith.select %57, %61, %62 : vector<16x32xi1>, vector<16x32xf32>
    %cst_22 = arith.constant dense<0xFF800000> : vector<16xf32>
    %64 = vector.multi_reduction <maximumf>, %63, %cst_22 [1] : vector<16x32xf32> to vector<16xf32>
    %65 = vector.shape_cast %64 : vector<16xf32> to vector<16x1xf32>
    %66 = vector.broadcast %65 : vector<16x1xf32> to vector<16x32xf32>
    %67 = arith.subf %63, %66 : vector<16x32xf32>
    %68 = math.exp %67 : vector<16x32xf32>
    %cst_23 = arith.constant dense<0.000000e+00> : vector<16xf32>
    %69 = vector.multi_reduction <add>, %68, %cst_23 [1] : vector<16x32xf32> to vector<16xf32>
    %70 = vector.shape_cast %69 : vector<16xf32> to vector<16x1xf32>
    %71 = tpu.reciprocal %70 {approx = true} : vector<16x1xf32> -> vector<16x1xf32>
    %72 = arith.mulf %70, %71 : vector<16x1xf32>
    %cst_24 = arith.constant 2.000000e+00 : f32
    %73 = vector.broadcast %cst_24 : f32 to vector<16x1xf32>
    %74 = arith.subf %73, %72 : vector<16x1xf32>
    %75 = arith.mulf %71, %74 : vector<16x1xf32>
    %76 = vector.broadcast %75 : vector<16x1xf32> to vector<16x32xf32>
    %77 = arith.mulf %68, %76 : vector<16x32xf32>
    %78 = vector.extract_strided_slice %22 {offsets = [0, 0], sizes = [32, 32], strides = [1, 1]} : vector<32x128xf32> to vector<32x32xf32>
    %cst_25 = arith.constant dense<0.000000e+00> : vector<16x32xf32>
    %79 = tpu.matmul %77, %78, %cst_25 {dimension_numbers = #tpu.dot_dimension_numbers<[1], [0], [0], [1], [0, 0, 1, 1], [], []>} : vector<16x32xf32>, vector<32x32xf32>, vector<16x32xf32> -> vector<16x32xf32>
    %80 = arith.addf %58, %79 : vector<16x32xf32>
    %81 = vector.extract_strided_slice %18 {offsets = [0, 8], sizes = [16, 8], strides = [1, 1]} : vector<16x32xf32> to vector<16x8xf32>
    %82 = vector.extract_strided_slice %21 {offsets = [0, 8], sizes = [32, 8], strides = [1, 1]} : vector<32x32xf32> to vector<32x8xf32>
    %cst_26 = arith.constant dense<0.000000e+00> : vector<16x32xf32>
    %83 = tpu.matmul %81, %82, %cst_26 {dimension_numbers = #tpu.dot_dimension_numbers<[1], [1], [0], [0], [0, 0, 1, 0], [], []>} : vector<16x8xf32>, vector<32x8xf32>, vector<16x32xf32> -> vector<16x32xf32>
    %cst_27 = arith.constant -1.000000e+30 : f32
    %84 = vector.broadcast %cst_27 : f32 to vector<16x32xf32>
    %85 = arith.select %57, %83, %84 : vector<16x32xi1>, vector<16x32xf32>
    %cst_28 = arith.constant dense<0xFF800000> : vector<16xf32>
    %86 = vector.multi_reduction <maximumf>, %85, %cst_28 [1] : vector<16x32xf32> to vector<16xf32>
    %87 = vector.shape_cast %86 : vector<16xf32> to vector<16x1xf32>
    %88 = vector.broadcast %87 : vector<16x1xf32> to vector<16x32xf32>
    %89 = arith.subf %85, %88 : vector<16x32xf32>
    %90 = math.exp %89 : vector<16x32xf32>
    %cst_29 = arith.constant dense<0.000000e+00> : vector<16xf32>
    %91 = vector.multi_reduction <add>, %90, %cst_29 [1] : vector<16x32xf32> to vector<16xf32>
    %92 = vector.shape_cast %91 : vector<16xf32> to vector<16x1xf32>
    %93 = tpu.reciprocal %92 {approx = true} : vector<16x1xf32> -> vector<16x1xf32>
    %94 = arith.mulf %92, %93 : vector<16x1xf32>
    %cst_30 = arith.constant 2.000000e+00 : f32
    %95 = vector.broadcast %cst_30 : f32 to vector<16x1xf32>
    %96 = arith.subf %95, %94 : vector<16x1xf32>
    %97 = arith.mulf %93, %96 : vector<16x1xf32>
    %98 = vector.broadcast %97 : vector<16x1xf32> to vector<16x32xf32>
    %99 = arith.mulf %90, %98 : vector<16x32xf32>
    %100 = vector.extract_strided_slice %22 {offsets = [0, 32], sizes = [32, 32], strides = [1, 1]} : vector<32x128xf32> to vector<32x32xf32>
    %cst_31 = arith.constant dense<0.000000e+00> : vector<16x32xf32>
    %101 = tpu.matmul %99, %100, %cst_31 {dimension_numbers = #tpu.dot_dimension_numbers<[1], [0], [0], [1], [0, 0, 1, 1], [], []>} : vector<16x32xf32>, vector<32x32xf32>, vector<16x32xf32> -> vector<16x32xf32>
    %102 = arith.addf %80, %101 : vector<16x32xf32>
    %103 = vector.extract_strided_slice %18 {offsets = [0, 16], sizes = [16, 8], strides = [1, 1]} : vector<16x32xf32> to vector<16x8xf32>
    %104 = vector.extract_strided_slice %21 {offsets = [0, 16], sizes = [32, 8], strides = [1, 1]} : vector<32x32xf32> to vector<32x8xf32>
    %cst_32 = arith.constant dense<0.000000e+00> : vector<16x32xf32>
    %105 = tpu.matmul %103, %104, %cst_32 {dimension_numbers = #tpu.dot_dimension_numbers<[1], [1], [0], [0], [0, 0, 1, 0], [], []>} : vector<16x8xf32>, vector<32x8xf32>, vector<16x32xf32> -> vector<16x32xf32>
    %cst_33 = arith.constant -1.000000e+30 : f32
    %106 = vector.broadcast %cst_33 : f32 to vector<16x32xf32>
    %107 = arith.select %57, %105, %106 : vector<16x32xi1>, vector<16x32xf32>
    %cst_34 = arith.constant dense<0xFF800000> : vector<16xf32>
    %108 = vector.multi_reduction <maximumf>, %107, %cst_34 [1] : vector<16x32xf32> to vector<16xf32>
    %109 = vector.shape_cast %108 : vector<16xf32> to vector<16x1xf32>
    %110 = vector.broadcast %109 : vector<16x1xf32> to vector<16x32xf32>
    %111 = arith.subf %107, %110 : vector<16x32xf32>
    %112 = math.exp %111 : vector<16x32xf32>
    %cst_35 = arith.constant dense<0.000000e+00> : vector<16xf32>
    %113 = vector.multi_reduction <add>, %112, %cst_35 [1] : vector<16x32xf32> to vector<16xf32>
    %114 = vector.shape_cast %113 : vector<16xf32> to vector<16x1xf32>
    %115 = tpu.reciprocal %114 {approx = true} : vector<16x1xf32> -> vector<16x1xf32>
    %116 = arith.mulf %114, %115 : vector<16x1xf32>
    %cst_36 = arith.constant 2.000000e+00 : f32
    %117 = vector.broadcast %cst_36 : f32 to vector<16x1xf32>
    %118 = arith.subf %117, %116 : vector<16x1xf32>
    %119 = arith.mulf %115, %118 : vector<16x1xf32>
    %120 = vector.broadcast %119 : vector<16x1xf32> to vector<16x32xf32>
    %121 = arith.mulf %112, %120 : vector<16x32xf32>
    %122 = vector.extract_strided_slice %22 {offsets = [0, 64], sizes = [32, 32], strides = [1, 1]} : vector<32x128xf32> to vector<32x32xf32>
    %cst_37 = arith.constant dense<0.000000e+00> : vector<16x32xf32>
    %123 = tpu.matmul %121, %122, %cst_37 {dimension_numbers = #tpu.dot_dimension_numbers<[1], [0], [0], [1], [0, 0, 1, 1], [], []>} : vector<16x32xf32>, vector<32x32xf32>, vector<16x32xf32> -> vector<16x32xf32>
    %124 = arith.addf %102, %123 : vector<16x32xf32>
    %125 = vector.extract_strided_slice %18 {offsets = [0, 24], sizes = [16, 8], strides = [1, 1]} : vector<16x32xf32> to vector<16x8xf32>
    %126 = vector.extract_strided_slice %21 {offsets = [0, 24], sizes = [32, 8], strides = [1, 1]} : vector<32x32xf32> to vector<32x8xf32>
    %cst_38 = arith.constant dense<0.000000e+00> : vector<16x32xf32>
    %127 = tpu.matmul %125, %126, %cst_38 {dimension_numbers = #tpu.dot_dimension_numbers<[1], [1], [0], [0], [0, 0, 1, 0], [], []>} : vector<16x8xf32>, vector<32x8xf32>, vector<16x32xf32> -> vector<16x32xf32>
    %cst_39 = arith.constant -1.000000e+30 : f32
    %128 = vector.broadcast %cst_39 : f32 to vector<16x32xf32>
    %129 = arith.select %57, %127, %128 : vector<16x32xi1>, vector<16x32xf32>
    %cst_40 = arith.constant dense<0xFF800000> : vector<16xf32>
    %130 = vector.multi_reduction <maximumf>, %129, %cst_40 [1] : vector<16x32xf32> to vector<16xf32>
    %131 = vector.shape_cast %130 : vector<16xf32> to vector<16x1xf32>
    %132 = vector.broadcast %131 : vector<16x1xf32> to vector<16x32xf32>
    %133 = arith.subf %129, %132 : vector<16x32xf32>
    %134 = math.exp %133 : vector<16x32xf32>
    %cst_41 = arith.constant dense<0.000000e+00> : vector<16xf32>
    %135 = vector.multi_reduction <add>, %134, %cst_41 [1] : vector<16x32xf32> to vector<16xf32>
    %136 = vector.shape_cast %135 : vector<16xf32> to vector<16x1xf32>
    %137 = tpu.reciprocal %136 {approx = true} : vector<16x1xf32> -> vector<16x1xf32>
    %138 = arith.mulf %136, %137 : vector<16x1xf32>
    %cst_42 = arith.constant 2.000000e+00 : f32
    %139 = vector.broadcast %cst_42 : f32 to vector<16x1xf32>
    %140 = arith.subf %139, %138 : vector<16x1xf32>
    %141 = arith.mulf %137, %140 : vector<16x1xf32>
    %142 = vector.broadcast %141 : vector<16x1xf32> to vector<16x32xf32>
    %143 = arith.mulf %134, %142 : vector<16x32xf32>
    %144 = vector.extract_strided_slice %22 {offsets = [0, 96], sizes = [32, 32], strides = [1, 1]} : vector<32x128xf32> to vector<32x32xf32>
    %cst_43 = arith.constant dense<0.000000e+00> : vector<16x32xf32>
    %145 = tpu.matmul %143, %144, %cst_43 {dimension_numbers = #tpu.dot_dimension_numbers<[1], [0], [0], [1], [0, 0, 1, 1], [], []>} : vector<16x32xf32>, vector<32x32xf32>, vector<16x32xf32> -> vector<16x32xf32>
    %146 = arith.addf %124, %145 : vector<16x32xf32>
    %147 = vector.broadcast %11 : vector<1x32xf32> to vector<16x32xf32>
    %148 = arith.addf %146, %147 : vector<16x32xf32>
    %149 = arith.addf %0, %148 : vector<16x32xf32>
    %cst_44 = arith.constant dense<0.000000e+00> : vector<16xf32>
    %150 = vector.multi_reduction <add>, %149, %cst_44 [1] : vector<16x32xf32> to vector<16xf32>
    %151 = vector.shape_cast %150 : vector<16xf32> to vector<16x1xf32>
    %cst_45 = arith.constant 3.200000e+01 : f32
    %152 = vector.broadcast %cst_45 : f32 to vector<16x1xf32>
    %153 = arith.divf %151, %152 : vector<16x1xf32>
    %154 = vector.broadcast %153 : vector<16x1xf32> to vector<16x32xf32>
    %155 = arith.subf %149, %154 : vector<16x32xf32>
    %156 = arith.mulf %155, %155 : vector<16x32xf32>
    %cst_46 = arith.constant dense<0.000000e+00> : vector<16xf32>
    %157 = vector.multi_reduction <add>, %156, %cst_46 [1] : vector<16x32xf32> to vector<16xf32>
    %158 = vector.shape_cast %157 : vector<16xf32> to vector<16x1xf32>
    %cst_47 = arith.constant 3.200000e+01 : f32
    %159 = vector.broadcast %cst_47 : f32 to vector<16x1xf32>
    %160 = arith.divf %158, %159 : vector<16x1xf32>
    %cst_48 = arith.constant 9.99999974E-6 : f32
    %161 = vector.broadcast %cst_48 : f32 to vector<16x1xf32>
    %162 = arith.addf %160, %161 : vector<16x1xf32>
    %163 = math.rsqrt %162 : vector<16x1xf32>
    %164 = vector.broadcast %163 : vector<16x1xf32> to vector<16x32xf32>
    %165 = arith.mulf %155, %164 : vector<16x32xf32>
    %166 = vector.broadcast %12 : vector<1x32xf32> to vector<16x32xf32>
    %167 = arith.mulf %165, %166 : vector<16x32xf32>
    %168 = vector.broadcast %13 : vector<1x32xf32> to vector<16x32xf32>
    %169 = arith.addf %167, %168 : vector<16x32xf32>
    %c0_49 = arith.constant 0 : index
    %c0_50 = arith.constant 0 : index
    %170 = vector.load %arg5[%c0_49, %c0_50] : memref<16x32xf32, #tpu.memory_space<vmem>>, vector<16x32xf32>
    tpu.vector_store %arg5[%c0_49, %c0_50], %169 {strides = array<i32>} : memref<16x32xf32, #tpu.memory_space<vmem>>, vector<16x32xf32>,
    return
  }
}

</mosaic_0001>

<bundles_post_ra>
// kernel: cross_attention_layer.1
= control target key start
LH: loop header
LB: loop body
LE: loop exit
PB: predicated region body
PF: predicated region fallthrough
CT: control target
= control target key end

     0   :  { %10 = vsyncpa [#allocation3], 0  ;;  %s2244_s0 = inlined_call_operand.hbm [shape: f32[16,32], index: 0, kind: input, shape index: {}]   ;;  %s2245_s1 = inlined_call_operand.hbm [shape: f32[32,32], index: 1, kind: input, shape index: {}]   ;;  %s2246_s2 = inlined_call_operand.vmem [shape: f32[16,32], index: 2, kind: input, shape index: {}]   ;;  %s2247_s3 = inlined_call_operand.hbm [shape: f32[32,32], index: 3, kind: input, shape index: {}]   ;;  %s2248_s4 = inlined_call_operand.hbm [shape: f32[40,192], index: 4, kind: input, shape index: {}]   ;;  %s2249_s5 = inlined_call_operand.hbm [shape: f32[16,32], index: 5, kind: output, shape index: {}]  }
   0x1   :  { %11 = vsyncpa [#allocation6], 0 }
   0x2   :  { %12 = vsyncpa [#allocation9], 0 }
   0x3   :  { %13 = vsyncpa [#allocation4], 0  ;;  %s1901_s18 = smov [#allocation5]   ;;  %s1902_s20 = smov [#allocation2]  }
   0x4   :  { %s31_s19 = sshll.u32 %s1901_s18, 4  ;;  %s19_s21 = sshll.u32 %s1902_s20, 4  ;;  %s32_s19 = int_to_ptr.vmem [resolvable:$true] %s31_s19  ;;  %s1949_s21 = int_to_ptr.vmem [resolvable:$true] %s19_s21 }
   0x5   :  { %s1783_s24 = scalar_lea.hbm %s2245_s1, 512 }
   0x6   :  { %p1784_p0 = scmp.ne.s32.totalorder %s2245_s1, %s1783_s24  ;;  %p1787_p1 = scmp.lt.u32.totalorder %s1783_s24, %s2245_s1 }
   0x8   :  { %p1789_p2 = pnand %p1787_p1, %p1784_p0 }
   0xa   :  { %1792 = shalt.err (!%p1789_p2)
}
   0xb   :  { %s1793_s29 = scalar_lea.vmem %s32_s19, 512  ;;  %p1798_p4 = scmp.lt.s32.totalorder %s32_s19, %s32_s19 }
   0xc   :  { %p1794_p3 = scmp.ne.s32.totalorder %s32_s19, %s1793_s29  ;;  %p1799_p5 = scmp.lt.s32.totalorder %s1793_s29, %s1793_s29 }
   0xe   :  { %p1800_p6 = por %p1799_p5, %p1798_p4 }
  0x10   :  { %p1801_p7 = pnand %p1800_p6, %p1794_p3 }
  0x12   :  { %1804 = shalt.err (!%p1801_p7)
}
  0x13   :  { %s1903_s30 = smov 128   ;;  %s1904_s6 = smov 8  }
  0x14   :  { %37 = dma.hbm_to_vmem [thread:$0]  %s2245_s1, 512, %s32_s19, [#allocation6], %s1903_s30, %s1903_s30, %s1904_s6  }
  0x15   :  { %s1805_s11 = scalar_lea.hbm %s2244_s0, 256 }
  0x16   :  { %p1806_p8 = scmp.ne.s32.totalorder %s2244_s0, %s1805_s11  ;;  %p1809_p9 = scmp.lt.u32.totalorder %s1805_s11, %s2244_s0 }
  0x18   :  { %p1811_p10 = pnand %p1809_p9, %p1806_p8 }
  0x1a   :  { %1814 = shalt.err (!%p1811_p10)
}
  0x1b   :  { %s1815_s16 = scalar_lea.vmem %s1949_s21, 256  ;;  %p1820_p12 = scmp.lt.s32.totalorder %s1949_s21, %s1949_s21 }
  0x1c   :  { %p1816_p11 = scmp.ne.s32.totalorder %s1949_s21, %s1815_s16  ;;  %p1821_p13 = scmp.lt.s32.totalorder %s1815_s16, %s1815_s16 }
  0x1e   :  { %p1822_p0 = por %p1821_p13, %p1820_p12 }
  0x20   :  { %p1823_p1 = pnand %p1822_p0, %p1816_p11 }
  0x22   :  { %1826 = shalt.err (!%p1823_p1)
}
  0x23   :  { %25 = dma.hbm_to_vmem [thread:$0]  %s2244_s0, 256, %s1949_s21, [#allocation3], %s1903_s30, %s1903_s30, %s1904_s6  }
  0x24   :  { %s1905_s18 = smov [#allocation7]   ;;  %s1906_s20 = smov [#allocation8]  }
  0x25   :  { %s45_s19 = sshll.u32 %s1905_s18, 4  ;;  %s57_s22 = sshll.u32 %s1906_s20, 4  ;;  %s46_s19 = int_to_ptr.vmem [resolvable:$true] %s45_s19  ;;  %s1986_s22 = int_to_ptr.vmem [resolvable:$true] %s57_s22 }
  0x26   :  { %s1827_s25 = scalar_lea.hbm %s2247_s3, 512 }
  0x27   :  { %p1828_p2 = scmp.ne.s32.totalorder %s2247_s3, %s1827_s25  ;;  %p1831_p3 = scmp.lt.u32.totalorder %s1827_s25, %s2247_s3 }
  0x29   :  { %p1833_p4 = pnand %p1831_p3, %p1828_p2 }
  0x2b   :  { %1836 = shalt.err (!%p1833_p4)
}
  0x2c   :  { %s1837_s0 = scalar_lea.vmem %s46_s19, 512  ;;  %p1842_p6 = scmp.lt.s32.totalorder %s46_s19, %s46_s19 }
  0x2d   :  { %p1838_p5 = scmp.ne.s32.totalorder %s46_s19, %s1837_s0  ;;  %p1843_p7 = scmp.lt.s32.totalorder %s1837_s0, %s1837_s0 }
  0x2f   :  { %p1844_p8 = por %p1843_p7, %p1842_p6 }
  0x31   :  { %p1845_p9 = pnand %p1844_p8, %p1838_p5 }
  0x33   :  { %1848 = shalt.err (!%p1845_p9)
}
  0x34   :  { %51 = dma.hbm_to_vmem [thread:$0]  %s2247_s3, 512, %s46_s19, [#allocation6], %s1903_s30, %s1903_s30, %s1904_s6  }
  0x35   :  { %s1849_s10 = scalar_lea.hbm %s2248_s4, 1280 }
  0x36   :  { %p1850_p10 = scmp.ne.s32.totalorder %s2248_s4, %s1849_s10  ;;  %p1853_p11 = scmp.lt.u32.totalorder %s1849_s10, %s2248_s4 }
  0x38   :  { %p1855_p12 = pnand %p1853_p11, %p1850_p10 }
  0x3a   :  { %1858 = shalt.err (!%p1855_p12)
}
  0x3b   :  { %s1859_s15 = scalar_lea.vmem %s1986_s22, 1280  ;;  %p1864_p0 = scmp.lt.s32.totalorder %s1986_s22, %s1986_s22 }
  0x3c   :  { %p1860_p13 = scmp.ne.s32.totalorder %s1986_s22, %s1859_s15  ;;  %p1865_p1 = scmp.lt.s32.totalorder %s1859_s15, %s1859_s15 }
  0x3e   :  { %p1866_p2 = por %p1865_p1, %p1864_p0 }
  0x40   :  { %p1867_p3 = pnand %p1866_p2, %p1860_p13 }
  0x42   :  { %1870 = shalt.err (!%p1867_p3)
}
  0x43   :  { %s1907_s3 = smov 256   ;;  %s1908_s16 = smov 16  }
  0x44   :  { %63 = dma.hbm_to_vmem [thread:$0]  %s2248_s4, 1280, %s1986_s22, [#allocation9], %s1907_s3, %s1907_s3, %s1908_s16  }
  0x45   :  { %1893 = dma.done.wait [#allocation3], 256  }
  0x46   :  { %1894 = vsyncadd [#allocation3], 4294967040 }
  0x47   :  { %1895 = dma.done.wait [#allocation6], 1024  }
  0x48   :  { %1896 = vsyncadd [#allocation6], 4294966272 }
  0x49   :  { %1897 = dma.done.wait [#allocation9], 1280  }
  0x4a   :  { %1898 = vsyncadd [#allocation9], 4294966016  ;;  %v217_v0 = vlaneseq  ;;  %v95_v2 = vld [vmem:[#allocation8 + $0x8] sm:$0xff]  ;;  %v97_v3 = vld [vmem:[#allocation8 + $0x18] sm:$0xff]  ;;  %vm103_vm0 = vcmask 261120   ;;  %s1909_s22 = smov 32  }
  0x4b   :  { %v99_v4 = vld [vmem:[#allocation8 + $0x28] sm:$0xff]  ;;  %v1557_v5 = vpack.c.bf16 %v97_v3, %v95_v2  ;;  %v101_v6 = vld [vmem:[#allocation8 + $0x38] sm:$0xff]  ;;  %v2023_v7 = vld [vmem:[#allocation2] sm:$0xff]  ;;  %vm387_vm1 = vcmask 64512   ;;  %s1911_s23 = smov 80   ;;  %s1912_s24 = smov 120  }
  0x4c   :  { %v2021_v1 = vshrl.u32 %v217_v0, 7  ;;  %v82_v8 = vld [vmem:[%s2246_s2] sm:$0xff]  ;;  %v1561_v9 = vpack.c.bf16 %v101_v6, %v99_v4  ;;  %v78_v11 = vld [vmem:[#allocation5] sm:$0xff]  ;;  %v2032_v13 = vld [vmem:[#allocation2 + $0x8] sm:$0xff]  ;;  %s1913_s25 = smov 96   ;;  %s1914_s26 = smov 112  }
  0x4d   :  { %v84_v10 = vadd.f32 %v82_v8, %v2023_v7  ;;  %1558 = vmatprep.subr.bf16.mxu0 %v1557_v5  ;;  %1463 = vmatprep.mubr.msk.f32.mxu1 %vm103_vm0, %v78_v11  ;;  %v83_v14 = vld [vmem:[%s2246_s2 + $0x8] sm:$0xff]  ;;  %v86_v15 = vld [vmem:[#allocation7] sm:$0xff]  ;;  %v79_v20 = vld [vmem:[#allocation5 + $0x8] sm:$0xff]  ;;  %s1910_s2 = smov 88   ;;  %s1915_s27 = smov 72  }
  0x4e   :  { %v225_v12 = vsub.s32 1, %v2021_v1  ;;  %1560 = vmatpush3.bf16.msra.mxu0 %v1557_v5  ;;  %v2037_v16 = vld [vmem:[#allocation8 + $0x40] sm:$0xff]  ;;  %v85_v18 = vadd.f32 %v83_v14, %v2032_v13  ;;  %v90_v19 = vadd.f32 %v86_v15, %v78_v11  ;;  %v87_v21 = vld [vmem:[#allocation7 + $0x8] sm:$0xff]  ;;  %v80_v22 = vld [vmem:[#allocation5 + $0x10] sm:$0xff]  ;;  %v219_v35 = vsub.s32 0, %v2021_v1  ;;  %s1916_s28 = smov 104  }
  0x4f   :  { %1446 = vmatprep.mubr.msk.f32.mxu0 %vm103_vm0, %v84_v10  ;;  %1562 = vmatprep.subr.bf16.mxu0 %v1561_v9  ;;  %v88_v23 = vld [vmem:[#allocation7 + $0x10] sm:$0xff]  ;;  %v91_v24 = vadd.f32 %v87_v21, %v79_v20  ;;  %v81_v26 = vld [vmem:[#allocation5 + $0x18] sm:$0xff]  ;;  %v94_v29 = vld [vmem:[#allocation8] sm:$0xff]  ;;  %s1917_s29 = smov 64   ;;  %s1918_s0 = smov [#allocation10]  }
  0x50   :  { %v226_v17 = vrot.slane %v2037_v16, %v225_v12  ;;  %v92_v25 = vadd.f32 %v88_v23, %v80_v22  ;;  %v89_v27 = vld [vmem:[#allocation7 + $0x18] sm:$0xff]  ;;  %v96_v30 = vld [vmem:[#allocation8 + $0x10] sm:$0xff]  ;;  %v98_v31 = vld [vmem:[#allocation8 + $0x20] sm:$0xff]  ;;  %v220_v36 = vrot.slane %v2037_v16, %v219_v35  ;;  %s1316_s21 = sshll.u32 %s1918_s0, 4  ;;  %s1317_s21 = int_to_ptr.vmem [resolvable:$true] %s1316_s21 }
  0x51   :  { %v93_v28 = vadd.f32 %v89_v27, %v81_v26  ;;  %v1565_v32 = vpack.c.bf16 %v96_v30, %v94_v29  ;;  %v100_v33 = vld [vmem:[#allocation8 + $0x30] sm:$0xff]  ;;  %vm2062_vm2 = vmpackc.low %vm387_vm1, %vm387_vm1  ;;  %s1871_s7 = scalar_lea.vmem %s1317_s21, 256  ;;  %p1876_p5 = scmp.lt.s32.totalorder %s1317_s21, %s1317_s21 }
  0x52   :  { %1564 = vmatpush3.bf16.msra.mxu0 %v1561_v9  ;;  %228 = vrot.lane.b32.xlu0 %v226_v17, %s1909_s22  ;;  %v1569_v34 = vpack.c.bf16 %v100_v33, %v98_v31  ;;  %p1872_p4 = scmp.ne.s32.totalorder %s1317_s21, %s1871_s7  ;;  %p1877_p6 = scmp.lt.s32.totalorder %s1871_s7, %s1871_s7 }
  0x53   :  { %1566 = vmatprep.subr.bf16.mxu1 %v1565_v32 }
  0x54   :  { %1568 = vmatpush3.bf16.msra.mxu1 %v1565_v32  ;;  %p1878_p7 = por %p1877_p6, %p1876_p5 }
  0x55   :  { %1447 = vmatmul.mubr.msk.f32.vlgmr.msra.gmra.mrb[0].mxu0 %vm103_vm0, %v85_v18  ;;  %1570 = vmatprep.subr.bf16.mxu1 %v1569_v34 }
  0x56   :  { %1449 = vmatprep.mubr.msk.f32.mxu0 %vm103_vm0, %v90_v19  ;;  %p1879_p8 = pnand %p1878_p7, %p1872_p4 }
  0x58   :  { %1572 = vmatpush3.bf16.msra.mxu1 %v1569_v34 }
  0x59   :  { %1450 = vmatmul.mubr.msk.f32.gmra.mrb[2].mxu0 %vm103_vm0, %v91_v24 }
  0x5a   :  { %1452 = vmatprep.mubr.msk.f32.mxu0 %vm103_vm0, %v92_v25 }
  0x5b   :  { %1464 = vmatmul.mubr.msk.f32.vlgmr.msra.gmra.mrb[0].mxu1 %vm103_vm0, %v79_v20 }
  0x5c   :  { %1466 = vmatprep.mubr.msk.f32.mxu1 %vm103_vm0, %v80_v22 }
  0x5d   :  { %1453 = vmatmul.mubr.msk.f32.gmra.mrb[4].mxu0 %vm103_vm0, %v93_v28 }
  0x5f   :  { %1467 = vmatmul.mubr.msk.f32.gmra.mrb[2].mxu1 %vm103_vm0, %v81_v26 }
  0xc4   :  { %v229_v40 = vpop.permute.xlu0 %228 }
 0x128   :  { %v1448_v37 = vpop.f32.mrb[0].mxu0 }
 0x129   :  { %v188_v38 = vpop.f32.mrb[1].mxu0  ;;  %v2053_v51 = vadd.f32 %v1448_v37, %v220_v36 }
 0x12a   :  { %v221_v39 = vadd.f32 %v220_v36, %v188_v38 }
 0x12c   :  { %v1451_v41 = vpop.f32.mrb[2].mxu0  ;;  %1477 = vmatprep.mubr.msk.f32.mxu0 %vm387_vm1, %v221_v39 }
 0x12d   :  { %v232_v42 = vadd.f32 %v1451_v41, %v229_v40  ;;  %v198_v43 = vpop.f32.mrb[3].mxu0  ;;  %v360_v41 = vand.u32 127, %v217_v0 }
 0x12e   :  { %v231_v44 = vadd.f32 %v229_v40, %v198_v43  ;;  %v1465_v6 = vpop.f32.mrb[0].mxu1 }
 0x12f   :  { %v313_v8 = vpop.f32.mrb[1].mxu1  ;;  %v365_v43 = vand.u32 1, %v360_v41 }
 0x130   :  { %v1454_v45 = vpop.f32.mrb[4].mxu0  ;;  %v1677_v46 = vpack.i.bf16 %v232_v42, %v231_v44  ;;  %v2106_v36 = vpack.i.bf16 %v1465_v6, %v313_v8  ;;  %v2108_v37 = vpack.c.bf16 %v1465_v6, %v313_v8  ;;  %v339_v44 = vand.u32 1, %v2021_v1 }
 0x131   :  { %v234_v47 = vadd.f32 %v1454_v45, %v229_v40  ;;  %v208_v48 = vpop.f32.mrb[5].mxu0 }
 0x132   :  { %v233_v49 = vadd.f32 %v229_v40, %v208_v48  ;;  %1678 = vrot.lane.b32.xlu0 %v1677_v46, %s1910_s2  ;;  %v1468_v12 = vpop.f32.mrb[2].mxu1  ;;  %v334_v40 = vadd.s32 8, %v2021_v1  ;;  %vm2121_vm4 = vcmp.eq.s32.totalorder %v339_v44, %v365_v43 }
 0x133   :  { %v323_v15 = vpop.f32.mrb[3].mxu1 }
 0x134   :  { %v1682_v50 = vpack.i.bf16 %v234_v47, %v233_v49  ;;  %v2110_v38 = vpack.i.bf16 %v1468_v12, %v323_v15  ;;  %v346_v42 = vand.u32 1, %v334_v40 }
 0x136   :  { %1693 = vrot.lane.b32.xlu0 %v1677_v46, %s1911_s23  ;;  %1683 = vrot.lane.b32.xlu1 %v1682_v50, %s1910_s2  ;;  %vm2117_vm3 = vcmp.eq.s32.totalorder %v346_v42, %v365_v43 }
 0x13a   :  { %509 = vrot.lane.b32.xlu0 %v2053_v51, %s1912_s24  ;;  %1688 = vrot.lane.b32.xlu1 %v1677_v46, %s1913_s25 }
 0x13e   :  { %1703 = vrot.lane.b32.xlu0 %v1682_v50, %s1911_s23  ;;  %507 = vrot.lane.b32.xlu1 %v221_v39, %s1912_s24 }
 0x142   :  { %814 = vrot.lane.b32.xlu0 %v221_v39, %s1914_s26  ;;  %1698 = vrot.lane.b32.xlu1 %v1682_v50, %s1913_s25 }
 0x146   :  { %1713 = vrot.lane.b32.xlu0 %v1682_v50, %s1915_s27  ;;  %1708 = vrot.lane.b32.xlu1 %v1677_v46, %s1915_s27 }
 0x14a   :  { %1040 = vrot.lane.b32.xlu0 %v2053_v51, %s1916_s28  ;;  %816 = vrot.lane.b32.xlu1 %v2053_v51, %s1914_s26 }
 0x14e   :  { %1038 = vrot.lane.b32.xlu1 %v221_v39, %s1916_s28  ;;  %v2112_v39 = vpack.c.bf16 %v1468_v12, %v323_v15 }
 0x1a4   :  { %v1679_v52 = vpop.permute.xlu0 %1678 }
 0x1a5   :  { %v1681_v53 = vunpack.i.h.bf16 %v1679_v52  ;;  %v1680_v54 = vunpack.i.l.bf16 %v1679_v52 }
 0x1a7   :  { %v1585_v56 = vpack.c.bf16 %v1681_v53, %v1680_v54 }
 0x1a8   :  { %v1694_v57 = vpop.permute.xlu0 %1693  ;;  %v1684_v58 = vpop.permute.xlu1 %1683 }
 0x1a9   :  { %v1686_v59 = vunpack.i.h.bf16 %v1684_v58  ;;  %v1685_v60 = vunpack.i.l.bf16 %v1684_v58  ;;  %1587 = vmatprep.subr.msk.bf16.mxu1 %vm2062_vm2, %v1585_v56  ;;  %v1696_v2 = vunpack.i.h.bf16 %v1694_v57  ;;  %v1695_v3 = vunpack.i.l.bf16 %v1694_v57 }
 0x1aa   :  { %1590 = vmatpush3.bf16.xpose.msk.msra.mxu1 %vm2062_vm2, %v1585_v56 }
 0x1ab   :  { %v1591_v61 = vpack.c.bf16 %v1686_v59, %v1685_v60  ;;  %v1613_v11 = vpack.c.bf16 %v1696_v2, %v1695_v3 }
 0x1ac   :  { %v510_v62 = vpop.permute.xlu0 %509  ;;  %v1689_v63 = vpop.permute.xlu1 %1688 }
 0x1ad   :  { %v1691_v4 = vunpack.i.h.bf16 %v1689_v63  ;;  %v1690_v5 = vunpack.i.l.bf16 %v1689_v63  ;;  %1593 = vmatprep.subr.msk.bf16.mxu1 %vm2062_vm2, %v1591_v61 }
 0x1af   :  { %v1573_v9 = vpack.c.bf16 %v1691_v4, %v1690_v5 }
 0x1b0   :  { %v508_v10 = vpop.permute.xlu1 %507  ;;  %v1704_v14 = vpop.permute.xlu0 %1703 }
 0x1b1   :  { %1575 = vmatprep.subr.msk.bf16.mxu0 %vm2062_vm2, %v1573_v9  ;;  %1488 = vmatprep.mubr.msk.f32.mxu1 %vm387_vm1, %v508_v10  ;;  %v1706_v18 = vunpack.i.h.bf16 %v1704_v14  ;;  %v1705_v19 = vunpack.i.l.bf16 %v1704_v14 }
 0x1b2   :  { %1578 = vmatpush3.bf16.xpose.msk.msra.mxu0 %vm2062_vm2, %v1573_v9  ;;  %1596 = vmatpush3.bf16.xpose.msk.msra.mxu1 %vm2062_vm2, %v1591_v61 }
 0x1b3   :  { %1615 = vmatprep.subr.msk.bf16.mxu1 %vm2062_vm2, %v1613_v11  ;;  %v1619_v23 = vpack.c.bf16 %v1706_v18, %v1705_v19 }
 0x1b4   :  { %v1699_v17 = vpop.permute.xlu1 %1698  ;;  %v815_v24 = vpop.permute.xlu0 %814 }
 0x1b5   :  { %v1701_v20 = vunpack.i.h.bf16 %v1699_v17  ;;  %v1700_v21 = vunpack.i.l.bf16 %v1699_v17 }
 0x1b7   :  { %v1579_v22 = vpack.c.bf16 %v1701_v20, %v1700_v21 }
 0x1b8   :  { %v1709_v25 = vpop.permute.xlu1 %1708  ;;  %v1714_v29 = vpop.permute.xlu0 %1713 }
 0x1b9   :  { %1581 = vmatprep.subr.msk.bf16.mxu0 %vm2062_vm2, %v1579_v22  ;;  %1489 = vmatmul.mubr.msk.f32.vlgmr.msra.gmra.mrb[4].mxu1 %vm387_vm1, %v510_v62  ;;  %v1711_v26 = vunpack.i.h.bf16 %v1709_v25  ;;  %v1710_v27 = vunpack.i.l.bf16 %v1709_v25  ;;  %v1716_v31 = vunpack.i.h.bf16 %v1714_v29  ;;  %v1715_v32 = vunpack.i.l.bf16 %v1714_v29 }
 0x1ba   :  { %1584 = vmatpush3.bf16.xpose.msk.msra.mxu0 %vm2062_vm2, %v1579_v22  ;;  %1618 = vmatpush3.bf16.xpose.msk.msra.mxu1 %vm2062_vm2, %v1613_v11 }
 0x1bb   :  { %1521 = vmatprep.mubr.msk.f32.mxu1 %vm387_vm1, %v815_v24  ;;  %1621 = vmatprep.subr.msk.bf16.mxu1 %vm2062_vm2, %v1619_v23  ;;  %v1633_v28 = vpack.c.bf16 %v1711_v26, %v1710_v27  ;;  %v1639_v33 = vpack.c.bf16 %v1716_v31, %v1715_v32 }
 0x1bc   :  { %v817_v30 = vpop.permute.xlu1 %816  ;;  %v1041_v35 = vpop.permute.xlu0 %1040 }
 0x1c0   :  { %v1039_v34 = vpop.permute.xlu1 %1038 }
 0x1c1   :  { %1478 = vmatmul.mubr.msk.f32.vlgmr.msra.gmra.mrb[6].mxu0 %vm387_vm1, %v2053_v51 }
 0x1c2   :  { %1624 = vmatpush3.bf16.xpose.msk.msra.mxu1 %vm2062_vm2, %v1619_v23 }
 0x1c3   :  { %1635 = vmatprep.subr.msk.bf16.mxu1 %vm2062_vm2, %v1633_v28 }
 0x1c9   :  { %1522 = vmatmul.mubr.msk.f32.vlgmr.msra.gmra.mrb[6].mxu1 %vm387_vm1, %v817_v30 }
 0x1ca   :  { %1638 = vmatpush3.bf16.xpose.msk.msra.mxu1 %vm2062_vm2, %v1633_v28  ;;  %1543 = vmatprep.mubr.msk.f32.mxu1 %vm387_vm1, %v1039_v34 }
 0x1cb   :  { %1641 = vmatprep.subr.msk.bf16.mxu1 %vm2062_vm2, %v1639_v33 }
 0x1d2   :  { %1644 = vmatpush3.bf16.xpose.msk.msra.mxu1 %vm2062_vm2, %v1639_v33 }
 0x1d9   :  { %1544 = vmatmul.mubr.msk.f32.vlgmr.msra.gmra.mrb[8].mxu1 %vm387_vm1, %v1041_v35 }
 0x28c   :  { %v1490_v47 = vpop.f32.mrb[4].mxu1 }
 0x28d   :  { %v607_v48 = vsel %vm2117_vm3, %v1490_v47, -1e+30  ;;  %v597_v49 = vpop.f32.mrb[5].mxu1 }
 0x28e   :  { %v606_v0 = vsel %vm2121_vm4, %v597_v49, -1e+30  ;;  %v611_v50 = vsel %vm103_vm0, %v607_v48, -inf }
 0x28f   :  { %612 = vmax.xlane.f32.xlu0 %v611_v50  ;;  %v608_v51 = vsel %vm103_vm0, %v606_v0, -inf }
 0x290   :  { %609 = vmax.xlane.f32.xlu1 %v608_v51 }
 0x294   :  { %v1479_v52 = vpop.f32.mrb[6].mxu0 }
 0x295   :  { %v478_v53 = vsel %vm2117_vm3, %v1479_v52, -1e+30  ;;  %v468_v54 = vpop.f32.mrb[7].mxu0 }
 0x296   :  { %v477_v55 = vsel %vm2121_vm4, %v468_v54, -1e+30  ;;  %v482_v56 = vsel %vm103_vm0, %v478_v53, -inf }
 0x297   :  { %483 = vmax.xlane.f32.xlu1 %v482_v56  ;;  %v479_v57 = vsel %vm103_vm0, %v477_v55, -inf }
 0x298   :  { %480 = vmax.xlane.f32.xlu0 %v479_v57 }
 0x29c   :  { %v1523_v58 = vpop.f32.mrb[6].mxu1 }
 0x29d   :  { %v914_v59 = vsel %vm2117_vm3, %v1523_v58, -1e+30  ;;  %v904_v60 = vpop.f32.mrb[7].mxu1 }
 0x29e   :  { %v2141_v61 = vsel %vm2121_vm4, %v904_v60, -1e+30  ;;  %v918_v62 = vsel %vm103_vm0, %v914_v59, -inf }
 0x29f   :  { %919 = vmax.xlane.f32.xlu1 %v918_v62  ;;  %v915_v63 = vsel %vm103_vm0, %v2141_v61, -inf }
 0x2a0   :  { %916 = vmax.xlane.f32.xlu0 %v915_v63 }
 0x2ac   :  { %v1545_v2 = vpop.f32.mrb[8].mxu1 }
 0x2ad   :  { %v1138_v3 = vsel %vm2117_vm3, %v1545_v2, -1e+30  ;;  %v1128_v4 = vpop.f32.mrb[9].mxu1 }
 0x2ae   :  { %v1137_v5 = vsel %vm2121_vm4, %v1128_v4, -1e+30  ;;  %v1142_v6 = vsel %vm103_vm0, %v1138_v3, -inf }
 0x2af   :  { %1143 = vmax.xlane.f32.xlu1 %v1142_v6  ;;  %v1139_v8 = vsel %vm103_vm0, %v1137_v5, -inf }
 0x2b0   :  { %1140 = vmax.xlane.f32.xlu0 %v1139_v8 }
 0x2c0   :  { %1723 = vrot.lane.b32.xlu1 %v2110_v38, %s1913_s25 }
 0x2c6   :  { %1718 = vrot.lane.b32.xlu0 %v2106_v36, %s1913_s25 }
 0x31c   :  { %v613_v9 = vpop.xlane.xlu0 %612 }
 0x31d   :  { %v615_v10 = vsub.f32 %v607_v48, %v613_v9  ;;  %v610_v11 = vpop.xlane.xlu1 %609 }
 0x31e   :  { %v614_v12 = vsub.f32 %v606_v0, %v610_v11 }
 0x31f   :  { %v618_v14 = vmul.f32 1.442695, %v615_v10 }
 0x320   :  { %v616_v15 = vmul.f32 1.442695, %v614_v12 }
 0x321   :  { %1747 = vpow2.f32 %v618_v14 }
 0x322   :  { %1749 = vpow2.f32 %v616_v15 }
 0x324   :  { %v484_v17 = vpop.xlane.xlu1 %483 }
 0x325   :  { %v486_v18 = vsub.f32 %v478_v53, %v484_v17  ;;  %v481_v19 = vpop.xlane.xlu0 %480 }
 0x326   :  { %v485_v20 = vsub.f32 %v477_v55, %v481_v19 }
 0x327   :  { %v489_v21 = vmul.f32 1.442695, %v486_v18 }
 0x328   :  { %v487_v22 = vmul.f32 1.442695, %v485_v20 }
 0x329   :  { %1751 = vpow2.f32 %v489_v21 }
 0x32a   :  { %1753 = vpow2.f32 %v487_v22 }
 0x32b   :  { %v2156_v23 = vpop.eup %1747 }
 0x32c   :  { %v2158_v24 = vpop.eup %1749  ;;  %v920_v25 = vpop.xlane.xlu1 %919  ;;  %v623_v26 = vsel %vm103_vm0, %v2156_v23, 0.0 }
 0x32d   :  { %v922_v27 = vsub.f32 %v914_v59, %v920_v25  ;;  %624 = vadd.xlane.f32.xlu1 %v623_v26  ;;  %v620_v28 = vsel %vm103_vm0, %v2158_v24, 0.0  ;;  %v917_v34 = vpop.xlane.xlu0 %916 }
 0x32e   :  { %621 = vadd.xlane.f32.xlu0 %v620_v28  ;;  %v921_v58 = vsub.f32 %v2141_v61, %v917_v34 }
 0x32f   :  { %v925_v29 = vmul.f32 1.442695, %v922_v27 }
 0x330   :  { %v923_v59 = vmul.f32 1.442695, %v921_v58 }
 0x331   :  { %1755 = vpow2.f32 %v925_v29 }
 0x333   :  { %v2164_v30 = vpop.eup %1751 }
 0x334   :  { %v2166_v31 = vpop.eup %1753  ;;  %v494_v32 = vsel %vm103_vm0, %v2164_v30, 0.0 }
 0x335   :  { %495 = vadd.xlane.f32.xlu1 %v494_v32  ;;  %v491_v33 = vsel %vm103_vm0, %v2166_v31, 0.0 }
 0x336   :  { %492 = vadd.xlane.f32.xlu0 %v491_v33 }
 0x33b   :  { %v2172_v35 = vpop.eup %1755 }
 0x33c   :  { %v1144_v40 = vpop.xlane.xlu1 %1143  ;;  %v930_v41 = vsel %vm103_vm0, %v2172_v35, 0.0 }
 0x33d   :  { %v1146_v42 = vsub.f32 %v1138_v3, %v1144_v40  ;;  %v1141_v43 = vpop.xlane.xlu0 %1140  ;;  %931 = vadd.xlane.f32.xlu1 %v930_v41 }
 0x33e   :  { %v1145_v44 = vsub.f32 %v1137_v5, %v1141_v43 }
 0x33f   :  { %v1149_v45 = vmul.f32 1.442695, %v1146_v42 }
 0x340   :  { %v1147_v46 = vmul.f32 1.442695, %v1145_v44  ;;  %v1724_v47 = vpop.permute.xlu1 %1723 }
 0x341   :  { %1757 = vpow2.f32 %v1149_v45  ;;  %v1719_v48 = vpop.permute.xlu0 %1718  ;;  %v1726_v49 = vunpack.i.h.bf16 %v1724_v47  ;;  %v1725_v0 = vunpack.i.l.bf16 %v1724_v47 }
 0x342   :  { %v1721_v50 = vunpack.i.h.bf16 %v1719_v48  ;;  %v1720_v51 = vunpack.i.l.bf16 %v1719_v48  ;;  %1759 = vpow2.f32 %v1147_v46 }
 0x343   :  { %v1601_v53 = vpack.c.bf16 %v1726_v49, %v1725_v0  ;;  %1761 = vpow2.f32 %v923_v59 }
 0x344   :  { %v1597_v52 = vpack.c.bf16 %v1721_v50, %v1720_v51 }
 0x346   :  { %1598 = vmatprep.subr.bf16.mxu0 %v1597_v52 }
 0x347   :  { %1600 = vmatpush3.bf16.msra.mxu0 %v1597_v52 }
 0x348   :  { %1602 = vmatprep.subr.bf16.mxu0 %v1601_v53 }
 0x34b   :  { %v2176_v54 = vpop.eup %1757  ;;  %1604 = vmatpush3.bf16.msra.mxu0 %v1601_v53 }
 0x34c   :  { %1728 = vrot.lane.b32.xlu0 %v2106_v36, %s1917_s29  ;;  %1606 = vmatprep.subr.bf16.mxu0 %v2108_v37  ;;  %v1154_v55 = vsel %vm103_vm0, %v2176_v54, 0.0  ;;  %v2182_v56 = vpop.eup %1759 }
 0x34d   :  { %1155 = vadd.xlane.f32.xlu1 %v1154_v55  ;;  %v1151_v57 = vsel %vm103_vm0, %v2182_v56, 0.0  ;;  %v2189_v60 = vpop.eup %1761 }
 0x34e   :  { %v927_v62 = vsel %vm103_vm0, %v2189_v60, 0.0 }
 0x351   :  { %1152 = vadd.xlane.f32.xlu1 %v1151_v57 }
 0x362   :  { %1738 = vrot.lane.b32.xlu1 %v2106_v36, %s1909_s22 }
 0x36b   :  { %928 = vadd.xlane.f32.xlu0 %v927_v62 }
 0x381   :  { %1733 = vrot.lane.b32.xlu0 %v2110_v38, %s1917_s29 }
 0x385   :  { %1743 = vrot.lane.b32.xlu0 %v2110_v38, %s1909_s22 }
 0x3ba   :  { %v625_v63 = vpop.xlane.xlu1 %624 }
 0x3bb   :  { %1763 = vrcp.f32 %v625_v63  ;;  %v622_v2 = vpop.xlane.xlu0 %621 }
 0x3bc   :  { %1765 = vrcp.f32 %v622_v2 }
 0x3c2   :  { %v496_v61 = vpop.xlane.xlu1 %495 }
 0x3c3   :  { %1767 = vrcp.f32 %v496_v61  ;;  %v493_v3 = vpop.xlane.xlu0 %492 }
 0x3c4   :  { %1769 = vrcp.f32 %v493_v3 }
 0x3c5   :  { %v1764_v36 = vpop.eup %1763 }
 0x3c6   :  { %v1766_v4 = vpop.eup %1765  ;;  %v629_v5 = vmul.f32 %v1764_v36, %v625_v63 }
 0x3c7   :  { %v628_v6 = vmul.f32 %v1766_v4, %v622_v2  ;;  %v1729_v38 = vpop.permute.xlu0 %1728 }
 0x3c8   :  { %v631_v8 = vsub.f32 2.0, %v629_v5  ;;  %v1731_v21 = vunpack.i.h.bf16 %v1729_v38  ;;  %v1730_v22 = vunpack.i.l.bf16 %v1729_v38 }
 0x3c9   :  { %v630_v9 = vsub.f32 2.0, %v628_v6 }
 0x3ca   :  { %v633_v10 = vmul.f32 %v1764_v36, %v631_v8  ;;  %v1625_v27 = vpack.c.bf16 %v1731_v21, %v1730_v22  ;;  %v932_v29 = vpop.xlane.xlu1 %931 }
 0x3cb   :  { %v632_v11 = vmul.f32 %v1766_v4, %v630_v9  ;;  %1771 = vrcp.f32 %v932_v29 }
 0x3cc   :  { %v635_v17 = vmul.f32 %v2156_v23, %v633_v10 }
 0x3cd   :  { %v1768_v12 = vpop.eup %1767  ;;  %v634_v14 = vmul.f32 %v2158_v24, %v632_v11 }
 0x3ce   :  { %v1770_v15 = vpop.eup %1769  ;;  %v500_v18 = vmul.f32 %v1768_v12, %v496_v61 }
 0x3cf   :  { %v499_v19 = vmul.f32 %v1770_v15, %v493_v3  ;;  %1499 = vmatprep.mubr.msk.f32.mxu0 %vm103_vm0, %v634_v14 }
 0x3d0   :  { %v502_v20 = vsub.f32 2.0, %v500_v18  ;;  %1500 = vmatmul.mubr.msk.f32.vlgmr.msra.gmra.mrb[8].mxu0 %vm103_vm0, %v635_v17 }
 0x3d1   :  { %v501_v25 = vsub.f32 2.0, %v499_v19  ;;  %1608 = vmatpush3.bf16.msra.mxu0 %v2108_v37 }
 0x3d2   :  { %v504_v26 = vmul.f32 %v1768_v12, %v502_v20  ;;  %1610 = vmatprep.subr.bf16.mxu0 %v2112_v39 }
 0x3d3   :  { %v503_v24 = vmul.f32 %v1770_v15, %v501_v25 }
 0x3d4   :  { %v506_v23 = vmul.f32 %v2164_v30, %v504_v26 }
 0x3d5   :  { %v505_v28 = vmul.f32 %v2166_v31, %v503_v24  ;;  %1612 = vmatpush3.bf16.msra.mxu0 %v2112_v39  ;;  %v1772_v31 = vpop.eup %1771 }
 0x3d6   :  { %1626 = vmatprep.subr.bf16.mxu0 %v1625_v27  ;;  %v936_v44 = vmul.f32 %v1772_v31, %v932_v29  ;;  %v1299_v29 = vsub.s32 3, %v2021_v1 }
 0x3d7   :  { %1510 = vmatprep.mubr.msk.f32.mxu0 %vm103_vm0, %v505_v28 }
 0x3d8   :  { %1511 = vmatmul.mubr.msk.f32.vlgmr.msra.gmra.mrb[8].mxu0 %vm103_vm0, %v506_v23  ;;  %v938_v49 = vsub.f32 2.0, %v936_v44 }
 0x3d9   :  { %1628 = vmatpush3.bf16.msra.mxu0 %v1625_v27 }
 0x3da   :  { %v1156_v32 = vpop.xlane.xlu1 %1155  ;;  %v940_v55 = vmul.f32 %v1772_v31, %v938_v49 }
 0x3dc   :  { %v942_v61 = vmul.f32 %v2172_v35, %v940_v55  ;;  %v1264_v35 = vsub.s32 2, %v2021_v1 }
 0x3de   :  { %v1153_v37 = vpop.xlane.xlu1 %1152 }
 0x3df   :  { %1773 = vrcp.f32 %v1153_v37 }
 0x3e2   :  { %v1739_v34 = vpop.permute.xlu1 %1738 }
 0x3e3   :  { %v1741_v41 = vunpack.i.h.bf16 %v1739_v34  ;;  %v1740_v30 = vunpack.i.l.bf16 %v1739_v34 }
 0x3e5   :  { %v1645_v47 = vpack.c.bf16 %v1741_v41, %v1740_v30 }
 0x3e9   :  { %v1774_v39 = vpop.eup %1773 }
 0x3ea   :  { %v1159_v46 = vmul.f32 %v1774_v39, %v1153_v37  ;;  %v1300_v37 = vrot.slane %v2037_v16, %v1299_v29 }
 0x3ec   :  { %v1161_v50 = vsub.f32 2.0, %v1159_v46 }
 0x3ee   :  { %v1163_v58 = vmul.f32 %v1774_v39, %v1161_v50 }
 0x3f0   :  { %v1165_v36 = vmul.f32 %v2182_v56, %v1163_v58 }
 0x3f8   :  { %v929_v33 = vpop.xlane.xlu0 %928 }
 0x3f9   :  { %1775 = vrcp.f32 %v929_v33 }
 0x3fa   :  { %1777 = vrcp.f32 %v1156_v32 }
 0x3fc   :  { %v1734_v40 = vpop.permute.xlu0 %1733 }
 0x3fd   :  { %v1736_v42 = vunpack.i.h.bf16 %v1734_v40  ;;  %v1735_v43 = vunpack.i.l.bf16 %v1734_v40 }
 0x3ff   :  { %v1629_v45 = vpack.c.bf16 %v1736_v42, %v1735_v43 }
 0x400   :  { %v1744_v53 = vpop.permute.xlu0 %1743 }
 0x401   :  { %1630 = vmatprep.subr.bf16.mxu0 %v1629_v45  ;;  %v1746_v62 = vunpack.i.h.bf16 %v1744_v53  ;;  %v1745_v63 = vunpack.i.l.bf16 %v1744_v53 }
 0x402   :  { %1632 = vmatpush3.bf16.msra.mxu0 %v1629_v45 }
 0x403   :  { %v1776_v48 = vpop.eup %1775  ;;  %1646 = vmatprep.subr.bf16.mxu0 %v1645_v47  ;;  %v1649_v4 = vpack.c.bf16 %v1746_v62, %v1745_v63 }
 0x404   :  { %v1778_v0 = vpop.eup %1777  ;;  %v935_v51 = vmul.f32 %v1776_v48, %v929_v33 }
 0x405   :  { %v1160_v57 = vmul.f32 %v1778_v0, %v1156_v32  ;;  %v1305_v32 = vsub.s32 4, %v2021_v1 }
 0x406   :  { %v937_v52 = vsub.f32 2.0, %v935_v51 }
 0x407   :  { %v1162_v3 = vsub.f32 2.0, %v1160_v57  ;;  %v1306_v40 = vrot.slane %v2037_v16, %v1305_v32 }
 0x408   :  { %v939_v59 = vmul.f32 %v1776_v48, %v937_v52 }
 0x409   :  { %v1164_v5 = vmul.f32 %v1778_v0, %v1162_v3 }
 0x40a   :  { %v941_v2 = vmul.f32 %v2189_v60, %v939_v59  ;;  %v1265_v60 = vrot.slane %v2037_v16, %v1264_v35 }
 0x40b   :  { %v1166_v6 = vmul.f32 %v2176_v54, %v1164_v5 }
 0x40c   :  { %1532 = vmatprep.mubr.msk.f32.mxu0 %vm103_vm0, %v941_v2 }
 0x40d   :  { %1533 = vmatmul.mubr.msk.f32.vlgmr.msra.gmra.mrb[8].mxu0 %vm103_vm0, %v942_v61 }
 0x40e   :  { %1648 = vmatpush3.bf16.msra.mxu0 %v1645_v47  ;;  %1554 = vmatprep.mubr.msk.f32.mxu0 %vm103_vm0, %v1165_v36 }
 0x40f   :  { %1650 = vmatprep.subr.bf16.mxu0 %v1649_v4 }
 0x412   :  { %1652 = vmatpush3.bf16.msra.mxu0 %v1649_v4 }
 0x415   :  { %1555 = vmatmul.mubr.msk.f32.vlgmr.msra.gmra.mrb[8].mxu0 %vm103_vm0, %v1166_v6 }
 0x4e8   :  { %v1556_v56 = vpop.f32.mrb[8].mxu0 }
 0x4e9   :  { %v1267_v8 = vadd.f32 %v1556_v56, %v1265_v60  ;;  %v1251_v9 = vpop.f32.mrb[9].mxu0 }
 0x4ea   :  { %v1266_v10 = vadd.f32 %v1265_v60, %v1251_v9 }
 0x4eb   :  { %v1269_v11 = vadd.f32 %v1267_v8, %v2032_v13 }
 0x4ec   :  { %v1268_v12 = vadd.f32 %v1266_v10, %v2023_v7 }
 0x4ed   :  { %v1273_v14 = vsel %vm103_vm0, %v1269_v11, 0.0 }
 0x4ee   :  { %1274 = vadd.xlane.f32.xlu0 %v1273_v14  ;;  %v1270_v38 = vsel %vm103_vm0, %v1268_v12, 0.0 }
 0x4ef   :  { %1271 = vadd.xlane.f32.xlu1 %v1270_v38 }
 0x57b   :  { %v1275_v54 = vpop.xlane.xlu0 %1274 }
 0x57c   :  { %v1278_v15 = vmul.f32 0.03125, %v1275_v54  ;;  %v1272_v17 = vpop.xlane.xlu1 %1271 }
 0x57d   :  { %v1277_v18 = vmul.f32 0.03125, %v1272_v17 }
 0x57e   :  { %v1280_v19 = vsub.f32 %v1269_v11, %v1278_v15 }
 0x57f   :  { %v1279_v20 = vsub.f32 %v1268_v12, %v1277_v18 }
 0x580   :  { %v1282_v21 = vmul.f32 %v1280_v19, %v1280_v19 }
 0x581   :  { %v1281_v22 = vmul.f32 %v1279_v20, %v1279_v20 }
 0x582   :  { %v1286_v25 = vsel %vm103_vm0, %v1282_v21, 0.0 }
 0x583   :  { %1287 = vadd.xlane.f32.xlu1 %v1286_v25  ;;  %v1283_v13 = vsel %vm103_vm0, %v1281_v22, 0.0 }
 0x584   :  { %1284 = vadd.xlane.f32.xlu0 %v1283_v13 }
 0x610   :  { %v1288_v7 = vpop.xlane.xlu1 %1287 }
 0x611   :  { %v1290_v26 = vmul.f32 0.03125, %v1288_v7  ;;  %v1285_v24 = vpop.xlane.xlu0 %1284 }
 0x612   :  { %v1289_v27 = vmul.f32 0.03125, %v1285_v24 }
 0x613   :  { %v1292_v28 = vadd.f32 1e-05, %v1290_v26 }
 0x614   :  { %v1291_v23 = vadd.f32 1e-05, %v1289_v27 }
 0x615   :  { %1779 = vrsqrt.f32 %v1292_v28 }
 0x616   :  { %1781 = vrsqrt.f32 %v1291_v23 }
 0x61f   :  { %v1780_v33 = vpop.eup %1779 }
 0x620   :  { %v1782_v34 = vpop.eup %1781  ;;  %v1296_v31 = vmul.f32 %v1780_v33, %v1280_v19 }
 0x621   :  { %v1295_v39 = vmul.f32 %v1782_v34, %v1279_v20 }
 0x622   :  { %v1302_v41 = vmul.f32 %v1300_v37, %v1296_v31 }
 0x623   :  { %v1301_v30 = vmul.f32 %v1300_v37, %v1295_v39 }
 0x624   :  { %v1308_v42 = vadd.f32 %v1306_v40, %v1302_v41 }
 0x625   :  { %v1307_v43 = vadd.f32 %v1306_v40, %v1301_v30 }
 0x626   :  { %1310 = vst.msk [vmem:[#allocation10 + $0x8] sm:$0xff] %vm103_vm0, %v1308_v42 }
 0x627   :  { %1309 = vst.msk [vmem:[#allocation10] sm:$0xff] %vm103_vm0, %v1307_v43 }
 0x628   :  { %1882 = shalt.err (!%p1879_p8)
}
 0x629   :  { %s1883_s10 = scalar_lea.hbm %s2249_s5, 256 }
 0x62a   :  { %p1884_p9 = scmp.ne.s32.totalorder %s2249_s5, %s1883_s10  ;;  %p1887_p10 = scmp.lt.u32.totalorder %s1883_s10, %s2249_s5 }
 0x62c   :  { %p1889_p11 = pnand %p1887_p10, %p1884_p9 }
 0x62e   :  { %1892 = shalt.err (!%p1889_p11)
}
 0x62f   :  { %1322 = dma.vmem_to_hbm [thread:$0]  %s1317_s21, 256, %s2249_s5, [#allocation4], %s1903_s30, %s1903_s30, %s1904_s6  }
 0x630   :  { %1899 = dma.done.wait [#allocation4], 256  }
 0x631   :  { %1900 = vsyncadd [#allocation4], 4294967040 }
 0x632   :  { %1326 = vsyncpa [#allocation3], 1 }
 0x633   :  { %1327 = vsyncpa [#allocation6], 1 }
 0x634   :  { %1328 = vsyncpa [#allocation9], 1 }
 0x635   :  { %1329 = vsyncpa [#allocation4], 1 }

</bundles_post_ra>
